<compile_context>
chip_gen: v5e
topology: v5e:2x2
jax: 0.10.0
libtpu: 0.0.40
codegen_flags: <defaults>
</compile_context>

<pallas_src>
import jax
import jax.numpy as jnp
from jax.experimental import pallas as pl
from jax.experimental.pallas import tpu as pltpu


# ---------------------------------------------------------------------------
# Kernel: one batch tile, all four layers fused.
# ---------------------------------------------------------------------------
def value_module_kernel(x_ref,
                        w1_ref, b1_ref,
                        w2_ref, b2_ref,
                        w3_ref, b3_ref,
                        wv_ref, bv_ref,
                        out_ref):
    # x is f32 [TB, Din] (Din unpadded); cast to bf16 in-kernel for the MXU.
    x = x_ref[...].astype(jnp.bfloat16)

    # fc1 + ReLU  (MXU bf16 inputs, f32 accumulate; bias/ReLU on f32 VPU)
    h = jnp.dot(x, w1_ref[...], preferred_element_type=jnp.float32) + b1_ref[...]
    h = jnp.maximum(h, 0.0).astype(jnp.bfloat16)

    # fc2 + ReLU
    h = jnp.dot(h, w2_ref[...], preferred_element_type=jnp.float32) + b2_ref[...]
    h = jnp.maximum(h, 0.0).astype(jnp.bfloat16)

    # fc3 + ReLU
    h = jnp.dot(h, w3_ref[...], preferred_element_type=jnp.float32) + b3_ref[...]
    h = jnp.maximum(h, 0.0).astype(jnp.bfloat16)

    # value head (NormedLinear): plain linear at forward time.
    # Compute at full 128 lanes, then store only the real n_action columns
    # (narrow output block -> 32x less output HBM traffic).
    v = jnp.dot(h, wv_ref[...], preferred_element_type=jnp.float32) + bv_ref[...]
    n_out = out_ref.shape[1]
    out_ref[...] = v[:, :n_out].astype(out_ref.dtype)


# ---------------------------------------------------------------------------
# Padding / parameter preparation helpers
# ---------------------------------------------------------------------------
def _round_up(n, m):
    return ((n + m - 1) // m) * m


def _pad2(a, rows, cols):
    r, c = a.shape
    return jnp.pad(a, ((0, rows - r), (0, cols - c)))


def prepare_params(params):
    """Pad hidden/output feature dims to multiples of 128 (lanes) once, cast
    weights to bf16 for the MXU, keep biases in f32 for the VPU. The input
    dim of w1 is left unpadded (full-array sublane dim) so x needs no K pad.
    Zero padding preserves the math exactly (padded columns stay 0 through
    ReLU, and padded value columns are sliced off before the store)."""
    w1, b1, w2, b2, w3, b3, wv, bv = params
    din = w1.shape[0]                      # unpadded (e.g. 32)
    h_p = _round_up(w1.shape[1], 128)
    n_p = _round_up(wv.shape[1], 128)

    w1p = _pad2(w1, din, h_p).astype(jnp.bfloat16)
    b1p = _pad2(b1, 1, h_p).astype(jnp.float32)
    w2p = _pad2(w2, h_p, h_p).astype(jnp.bfloat16)
    b2p = _pad2(b2, 1, h_p).astype(jnp.float32)
    w3p = _pad2(w3, h_p, h_p).astype(jnp.bfloat16)
    b3p = _pad2(b3, 1, h_p).astype(jnp.float32)
    wvp = _pad2(wv, h_p, n_p).astype(jnp.bfloat16)
    bvp = _pad2(bv, 1, n_p).astype(jnp.float32)
    return (w1p, b1p, w2p, b2p, w3p, b3p, wvp, bvp)


# ---------------------------------------------------------------------------
# Forward wrapper
# ---------------------------------------------------------------------------
def value_module_forward(x, prepared_params, n_action, *, batch_tile=1024):
    """x: [B, feature_extractor] f32 (unpadded). prepared_params from
    prepare_params(). Returns [B, n_action] f32."""
    w1, b1, w2, b2, w3, b3, wv, bv = prepared_params
    B, din = x.shape
    assert din == w1.shape[0], "x feature dim must match fc1 input dim"

    # Batch tile: multiple of 16 (bf16 sublane pair); large default so the
    # per-grid-step fixed overhead and DMAs amortize over real MXU work.
    # Don't over-pad tiny batches.
    tb = min(_round_up(batch_tile, 16), _round_up(B, 16))
    b_pad = _round_up(B, tb)
    grid = (b_pad // tb,)

    # Only batch-dim zero padding (no feature pad, no dtype copy of x).
    x_p = x if b_pad == B else jnp.pad(x, ((0, b_pad - B), (0, 0)))

    # Weights/biases: constant index_map -> DMA'd once, VMEM-resident
    # across all batch tiles.
    def resident(arr):
        return pl.BlockSpec(arr.shape, lambda i: (0, 0))

    out = pl.pallas_call(
        value_module_kernel,
        out_shape=jax.ShapeDtypeStruct((b_pad, n_action), jnp.float32),
        grid=grid,
        in_specs=[
            pl.BlockSpec((tb, din), lambda i: (i, 0)),   # x tile (f32, Din unpadded)
            resident(w1), resident(b1),
            resident(w2), resident(b2),
            resident(w3), resident(b3),
            resident(wv), resident(bv),
        ],
        # Narrow, full-dim output block: 16 B/row instead of 512 B/row.
        out_specs=pl.BlockSpec((tb, n_action), lambda i: (i, 0)),
        compiler_params=pltpu.CompilerParams(
            # On v7x with large B (grid >= 2), this shards batch tiles across
            # the two TensorCores; pltpu.CORE_PARALLEL is a further knob there.
            dimension_semantics=("parallel",)),
    )(x_p, w1, b1, w2, b2, w3, b3, wv, bv)

    # Slice off batch padding only (output is already n_action wide).
    return out[:B] if b_pad != B else out


# ---------------------------------------------------------------------------
# Deterministic init mimicking nn.Linear defaults + NormedLinear scaling
# ---------------------------------------------------------------------------
def init_params(key, feature_extractor, last_hidden, n_action):
    ks = jax.random.split(key, 8)

    def linear(kw, kb, fan_in, fan_out):
        bound = 1.0 / jnp.sqrt(fan_in)
        # Stored [in, out] (transpose of PyTorch's [out, in]) so kernel does x @ W.
        w = jax.random.uniform(kw, (fan_in, fan_out), jnp.float32, -bound, bound)
        b = jax.random.uniform(kb, (1, fan_out), jnp.float32, -bound, bound)
        return w, b

    w1, b1 = linear(ks[0], ks[1], feature_extractor, last_hidden)
    w2, b2 = linear(ks[2], ks[3], last_hidden, last_hidden)
    w3, b3 = linear(ks[4], ks[5], last_hidden, last_hidden)
    wv, bv = linear(ks[6], ks[7], last_hidden, n_action)

    # NormedLinear: normalize per output unit over the input dim, scale 0.1.
    # Layout is [in, out] -> normalize columns.
    scale = 0.1
    col_norm = jnp.linalg.norm(wv, axis=0, keepdims=True)
    wv = wv * (scale / col_norm)

    return (w1, b1, w2, b2, w3, b3, wv, bv)


def reference_forward(x, params):
    w1, b1, w2, b2, w3, b3, wv, bv = params
    h1 = jnp.maximum(x @ w1 + b1, 0.0)
    h2 = jnp.maximum(h1 @ w2 + b2, 0.0)
    h3 = jnp.maximum(h2 @ w3 + b3, 0.0)
    return h3 @ wv + bv


if __name__ == "__main__":
    # Synthetic hyperparameters (args): n_hidden=32, n_rnn_layers=1,
    # rnn_directions=1, n_action=4.
    n_hidden, n_layers, directions, n_action = 32, 1, 1, 4
    feature_extractor = n_hidden * n_layers * directions      # 32
    last_hidden = feature_extractor * 2                       # 64
    batch = 2

    key = jax.random.PRNGKey(0)
    k_x, k_p = jax.random.split(key)

    x = jax.random.normal(k_x, (batch, feature_extractor), jnp.float32)
    params = init_params(k_p, feature_extractor, last_hidden, n_action)
    prepared = prepare_params(params)

    out = value_module_forward(x, prepared, n_action)
    out = jax.block_until_ready(out)

    ref = reference_forward(x, params)          # pure f32 reference
    assert out.shape == (batch, n_action)
    # Looser tolerance: kernel runs bf16 MXU operands with f32 accumulation.
    assert jnp.allclose(out, ref, atol=2e-2, rtol=2e-2), "mismatch vs reference"

    print("KERNEL_OK")
</pallas_src>

<mosaic_0001>
module attributes {stable_mosaic.version = 11 : i64} {
  func.func @value_module_kernel(%arg0: i32, %arg1: memref<16x32xf32, #tpu.memory_space<vmem>>, %arg2: memref<32x128xbf16, #tpu.memory_space<vmem>>, %arg3: memref<1x128xf32, #tpu.memory_space<vmem>>, %arg4: memref<128x128xbf16, #tpu.memory_space<vmem>>, %arg5: memref<1x128xf32, #tpu.memory_space<vmem>>, %arg6: memref<128x128xbf16, #tpu.memory_space<vmem>>, %arg7: memref<1x128xf32, #tpu.memory_space<vmem>>, %arg8: memref<128x128xbf16, #tpu.memory_space<vmem>>, %arg9: memref<1x128xf32, #tpu.memory_space<vmem>>, %arg10: memref<16x4xf32, #tpu.memory_space<vmem>>) attributes {dimension_semantics = [#tpu.dimension_semantics<parallel>], iteration_bounds = array<i64: 1>, scalar_prefetch = 0 : i64, scratch_operands = 0 : i64, tpu.core_type = #tpu.core_type<tc>, window_params = [{transform_indices = @transform_0, window_bounds = array<i64: 16, 32>}, {pipeline_mode = #tpu.pipeline_mode<synchronous>, transform_indices = @transform_1, window_bounds = array<i64: 32, 128>}, {pipeline_mode = #tpu.pipeline_mode<synchronous>, transform_indices = @transform_2, window_bounds = array<i64: 1, 128>}, {pipeline_mode = #tpu.pipeline_mode<synchronous>, transform_indices = @transform_3, window_bounds = array<i64: 128, 128>}, {pipeline_mode = #tpu.pipeline_mode<synchronous>, transform_indices = @transform_4, window_bounds = array<i64: 1, 128>}, {pipeline_mode = #tpu.pipeline_mode<synchronous>, transform_indices = @transform_5, window_bounds = array<i64: 128, 128>}, {pipeline_mode = #tpu.pipeline_mode<synchronous>, transform_indices = @transform_6, window_bounds = array<i64: 1, 128>}, {pipeline_mode = #tpu.pipeline_mode<synchronous>, transform_indices = @transform_7, window_bounds = array<i64: 128, 128>}, {pipeline_mode = #tpu.pipeline_mode<synchronous>, transform_indices = @transform_8, window_bounds = array<i64: 1, 128>}, {transform_indices = @transform_9, window_bounds = array<i64: 16, 4>}]} {
    %c0 = arith.constant 0 : index
    %c0_0 = arith.constant 0 : index
    %0 = vector.load %arg1[%c0, %c0_0] : memref<16x32xf32, #tpu.memory_space<vmem>>, vector<16x32xf32>
    %1 = arith.truncf %0 : vector<16x32xf32> to vector<16x32xbf16>
    %c0_1 = arith.constant 0 : index
    %c0_2 = arith.constant 0 : index
    %2 = vector.load %arg2[%c0_1, %c0_2] : memref<32x128xbf16, #tpu.memory_space<vmem>>, vector<32x128xbf16>
    %cst = arith.constant dense<0.000000e+00> : vector<16x128xf32>
    %3 = tpu.matmul %1, %2, %cst {dimension_numbers = #tpu.dot_dimension_numbers<[1], [0], [0], [1], [0, 0, 1, 1], [], []>} : vector<16x32xbf16>, vector<32x128xbf16>, vector<16x128xf32> -> vector<16x128xf32>
    %c0_3 = arith.constant 0 : index
    %c0_4 = arith.constant 0 : index
    %4 = vector.load %arg3[%c0_3, %c0_4] : memref<1x128xf32, #tpu.memory_space<vmem>>, vector<1x128xf32>
    %5 = vector.broadcast %4 : vector<1x128xf32> to vector<16x128xf32>
    %6 = arith.addf %3, %5 : vector<16x128xf32>
    %cst_5 = arith.constant 0.000000e+00 : f32
    %7 = vector.broadcast %cst_5 : f32 to vector<16x128xf32>
    %8 = arith.maximumf %6, %7 : vector<16x128xf32>
    %9 = arith.truncf %8 : vector<16x128xf32> to vector<16x128xbf16>
    %c0_6 = arith.constant 0 : index
    %c0_7 = arith.constant 0 : index
    %10 = vector.load %arg4[%c0_6, %c0_7] : memref<128x128xbf16, #tpu.memory_space<vmem>>, vector<128x128xbf16>
    %cst_8 = arith.constant dense<0.000000e+00> : vector<16x128xf32>
    %11 = tpu.matmul %9, %10, %cst_8 {dimension_numbers = #tpu.dot_dimension_numbers<[1], [0], [0], [1], [0, 0, 1, 1], [], []>} : vector<16x128xbf16>, vector<128x128xbf16>, vector<16x128xf32> -> vector<16x128xf32>
    %c0_9 = arith.constant 0 : index
    %c0_10 = arith.constant 0 : index
    %12 = vector.load %arg5[%c0_9, %c0_10] : memref<1x128xf32, #tpu.memory_space<vmem>>, vector<1x128xf32>
    %13 = vector.broadcast %12 : vector<1x128xf32> to vector<16x128xf32>
    %14 = arith.addf %11, %13 : vector<16x128xf32>
    %cst_11 = arith.constant 0.000000e+00 : f32
    %15 = vector.broadcast %cst_11 : f32 to vector<16x128xf32>
    %16 = arith.maximumf %14, %15 : vector<16x128xf32>
    %17 = arith.truncf %16 : vector<16x128xf32> to vector<16x128xbf16>
    %c0_12 = arith.constant 0 : index
    %c0_13 = arith.constant 0 : index
    %18 = vector.load %arg6[%c0_12, %c0_13] : memref<128x128xbf16, #tpu.memory_space<vmem>>, vector<128x128xbf16>
    %cst_14 = arith.constant dense<0.000000e+00> : vector<16x128xf32>
    %19 = tpu.matmul %17, %18, %cst_14 {dimension_numbers = #tpu.dot_dimension_numbers<[1], [0], [0], [1], [0, 0, 1, 1], [], []>} : vector<16x128xbf16>, vector<128x128xbf16>, vector<16x128xf32> -> vector<16x128xf32>
    %c0_15 = arith.constant 0 : index
    %c0_16 = arith.constant 0 : index
    %20 = vector.load %arg7[%c0_15, %c0_16] : memref<1x128xf32, #tpu.memory_space<vmem>>, vector<1x128xf32>
    %21 = vector.broadcast %20 : vector<1x128xf32> to vector<16x128xf32>
    %22 = arith.addf %19, %21 : vector<16x128xf32>
    %cst_17 = arith.constant 0.000000e+00 : f32
    %23 = vector.broadcast %cst_17 : f32 to vector<16x128xf32>
    %24 = arith.maximumf %22, %23 : vector<16x128xf32>
    %25 = arith.truncf %24 : vector<16x128xf32> to vector<16x128xbf16>
    %c0_18 = arith.constant 0 : index
    %c0_19 = arith.constant 0 : index
    %26 = vector.load %arg8[%c0_18, %c0_19] : memref<128x128xbf16, #tpu.memory_space<vmem>>, vector<128x128xbf16>
    %cst_20 = arith.constant dense<0.000000e+00> : vector<16x128xf32>
    %27 = tpu.matmul %25, %26, %cst_20 {dimension_numbers = #tpu.dot_dimension_numbers<[1], [0], [0], [1], [0, 0, 1, 1], [], []>} : vector<16x128xbf16>, vector<128x128xbf16>, vector<16x128xf32> -> vector<16x128xf32>
    %c0_21 = arith.constant 0 : index
    %c0_22 = arith.constant 0 : index
    %28 = vector.load %arg9[%c0_21, %c0_22] : memref<1x128xf32, #tpu.memory_space<vmem>>, vector<1x128xf32>
    %29 = vector.broadcast %28 : vector<1x128xf32> to vector<16x128xf32>
    %30 = arith.addf %27, %29 : vector<16x128xf32>
    %31 = vector.extract_strided_slice %30 {offsets = [0, 0], sizes = [16, 4], strides = [1, 1]} : vector<16x128xf32> to vector<16x4xf32>
    %c0_23 = arith.constant 0 : index
    %c0_24 = arith.constant 0 : index
    %32 = vector.load %arg10[%c0_23, %c0_24] : memref<16x4xf32, #tpu.memory_space<vmem>>, vector<16x4xf32>
    tpu.vector_store %arg10[%c0_23, %c0_24], %31 {strides = array<i32>} : memref<16x4xf32, #tpu.memory_space<vmem>>, vector<16x4xf32>,
    return
  }
  func.func @transform_0(%arg0: i32) -> (i32, i32) {
    %c0_i32 = arith.constant 0 : i32
    %c0_i32_0 = arith.constant 0 : i32
    return %arg0, %c0_i32 : i32, i32
  }
  func.func @transform_1(%arg0: i32) -> (i32, i32) {
    %c0_i32 = arith.constant 0 : i32
    %c0_i32_0 = arith.constant 0 : i32
    %c0_i32_1 = arith.constant 0 : i32
    return %c0_i32, %c0_i32_0 : i32, i32
  }
  func.func @transform_2(%arg0: i32) -> (i32, i32) {
    %c0_i32 = arith.constant 0 : i32
    %c0_i32_0 = arith.constant 0 : i32
    %c0_i32_1 = arith.constant 0 : i32
    return %c0_i32, %c0_i32_0 : i32, i32
  }
  func.func @transform_3(%arg0: i32) -> (i32, i32) {
    %c0_i32 = arith.constant 0 : i32
    %c0_i32_0 = arith.constant 0 : i32
    %c0_i32_1 = arith.constant 0 : i32
    return %c0_i32, %c0_i32_0 : i32, i32
  }
  func.func @transform_4(%arg0: i32) -> (i32, i32) {
    %c0_i32 = arith.constant 0 : i32
    %c0_i32_0 = arith.constant 0 : i32
    %c0_i32_1 = arith.constant 0 : i32
    return %c0_i32, %c0_i32_0 : i32, i32
  }
  func.func @transform_5(%arg0: i32) -> (i32, i32) {
    %c0_i32 = arith.constant 0 : i32
    %c0_i32_0 = arith.constant 0 : i32
    %c0_i32_1 = arith.constant 0 : i32
    return %c0_i32, %c0_i32_0 : i32, i32
  }
  func.func @transform_6(%arg0: i32) -> (i32, i32) {
    %c0_i32 = arith.constant 0 : i32
    %c0_i32_0 = arith.constant 0 : i32
    %c0_i32_1 = arith.constant 0 : i32
    return %c0_i32, %c0_i32_0 : i32, i32
  }
  func.func @transform_7(%arg0: i32) -> (i32, i32) {
    %c0_i32 = arith.constant 0 : i32
    %c0_i32_0 = arith.constant 0 : i32
    %c0_i32_1 = arith.constant 0 : i32
    return %c0_i32, %c0_i32_0 : i32, i32
  }
  func.func @transform_8(%arg0: i32) -> (i32, i32) {
    %c0_i32 = arith.constant 0 : i32
    %c0_i32_0 = arith.constant 0 : i32
    %c0_i32_1 = arith.constant 0 : i32
    return %c0_i32, %c0_i32_0 : i32, i32
  }
  func.func @transform_9(%arg0: i32) -> (i32, i32) {
    %c0_i32 = arith.constant 0 : i32
    %c0_i32_0 = arith.constant 0 : i32
    return %arg0, %c0_i32 : i32, i32
  }
}

</mosaic_0001>

<bundles_post_ra>
// kernel: tpu_custom_call.1
= control target key start
LH: loop header
LB: loop body
LE: loop exit
PB: predicated region body
PF: predicated region fallthrough
CT: control target
= control target key end

     0   :  { %14 = vsyncpa [#allocation3], 0  ;;  %s791_s0 = inlined_call_operand.hbm [shape: f32[16,32], index: 0, kind: input, shape index: {}]   ;;  %s792_s1 = inlined_call_operand.hbm [shape: bf16[32,128], index: 1, kind: input, shape index: {}]   ;;  %s793_s2 = inlined_call_operand.vmem [shape: f32[1,128], index: 2, kind: input, shape index: {}]   ;;  %s794_s3 = inlined_call_operand.hbm [shape: bf16[128,128], index: 3, kind: input, shape index: {}]   ;;  %s795_s4 = inlined_call_operand.vmem [shape: f32[1,128], index: 4, kind: input, shape index: {}]   ;;  %s796_s5 = inlined_call_operand.hbm [shape: bf16[128,128], index: 5, kind: input, shape index: {}]   ;;  %s797_s6 = inlined_call_operand.vmem [shape: f32[1,128], index: 6, kind: input, shape index: {}]   ;;  %s798_s7 = inlined_call_operand.hbm [shape: bf16[128,128], index: 7, kind: input, shape index: {}]   ;;  %s799_s8 = inlined_call_operand.vmem [shape: f32[1,128], index: 8, kind: input, shape index: {}]   ;;  %s800_s9 = inlined_call_operand.vmem [shape: f32[16,4], index: 9, kind: output, shape index: {}]  }
   0x1   :  { %15 = vsyncpa [#allocation5], 0  ;;  %s34_s11 = sshll.u32 %s792_s1, 4  ;;  %s35_s11 = int_to_ptr.hbm [resolvable:$true] %s34_s11 }
   0x2   :  { %16 = vsyncpa [#allocation8], 0  ;;  %s687_s12 = smov [#allocation4]   ;;  %s64_s16 = sshll.u32 %s796_s5, 4  ;;  %s65_s16 = int_to_ptr.hbm [resolvable:$true] %s64_s16 }
   0x3   :  { %s36_s13 = sshll.u32 %s687_s12, 4  ;;  %s688_s17 = smov 64   ;;  %s37_s13 = int_to_ptr.vmem [resolvable:$true] %s36_s13 }
   0x4   :  { %s689_s18 = smov 4   ;;  %s690_s19 = smov [#allocation7]  }
   0x5   :  { %42 = dma.hbm_to_vmem [thread:$0]  %s35_s11, 256, %s37_s13, [#allocation5], %s688_s17, %s688_s17, %s689_s18  }
   0x6   :  { %s66_s20 = sshll.u32 %s690_s19, 4  ;;  %s21_s22 = sshll.u32 %s791_s0, 4  ;;  %s67_s20 = int_to_ptr.vmem [resolvable:$true] %s66_s20  ;;  %s22_s22 = int_to_ptr.hbm [resolvable:$true] %s21_s22 }
   0x7   :  { %72 = dma.hbm_to_vmem [thread:$0]  %s65_s16, 1024, %s67_s20, [#allocation8], %s688_s17, %s688_s17, %s689_s18  }
   0x8   :  { %s691_s5 = smov [#allocation2]   ;;  %s49_s26 = sshll.u32 %s794_s3, 4  ;;  %s50_s26 = int_to_ptr.hbm [resolvable:$true] %s49_s26 }
   0x9   :  { %s23_s23 = sshll.u32 %s691_s5, 4  ;;  %s692_s27 = smov 128   ;;  %s24_s23 = int_to_ptr.vmem [resolvable:$true] %s23_s23 }
   0xa   :  { %s693_s28 = smov 8   ;;  %s694_s29 = smov [#allocation6]  }
   0xb   :  { %29 = dma.hbm_to_vmem [thread:$0]  %s22_s22, 256, %s24_s23, [#allocation3], %s692_s27, %s692_s27, %s693_s28  }
   0xc   :  { %s51_s30 = sshll.u32 %s694_s29, 4  ;;  %s79_s11 = sshll.u32 %s798_s7, 4  ;;  %s52_s30 = int_to_ptr.vmem [resolvable:$true] %s51_s30  ;;  %s80_s11 = int_to_ptr.hbm [resolvable:$true] %s79_s11 }
   0xd   :  { %57 = dma.hbm_to_vmem [thread:$0]  %s50_s26, 1024, %s52_s30, [#allocation5], %s688_s17, %s688_s17, %s689_s18  }
   0xe   :  { %s695_s12 = smov [#allocation9]  }
   0xf   :  { %s81_s13 = sshll.u32 %s695_s12, 4  ;;  %s82_s13 = int_to_ptr.vmem [resolvable:$true] %s81_s13 }
  0x10   :  { %87 = dma.hbm_to_vmem [thread:$0]  %s80_s11, 1024, %s82_s13, [#allocation8], %s688_s17, %s688_s17, %s689_s18  }
  0x11   :  { %681 = dma.done.wait [#allocation3], 256  }
  0x12   :  { %682 = vsyncadd [#allocation3], 4294967040 }
  0x13   :  { %683 = dma.done.wait [#allocation5], 1280  }
  0x14   :  { %684 = vsyncadd [#allocation5], 4294966016 }
  0x15   :  { %685 = dma.done.wait [#allocation8], 2048  }
  0x16   :  { %686 = vsyncadd [#allocation8], 4294965248  ;;  %v523_v0 = vld [vmem:[#allocation4 + $0x8] sm:$0xff]  ;;  %v522_v1 = vld [vmem:[#allocation4] sm:$0xff]  ;;  %vm134_vm0 = vcmask 261120   ;;  %vm407_vm1 = vcmask 31744  }
  0x17   :  { %v531_v2 = vld [vmem:[#allocation6 + $0x38] sm:$0xff]  ;;  %144 = vmatpush.bf16.msra.mxu0 %v523_v0  ;;  %v111_v3 = vld [vmem:[#allocation2] sm:$0xff]  ;;  %v112_v4 = vld [vmem:[#allocation2 + $0x8] sm:$0xff] }
  0x18   :  { %223 = vmatpush.bf16.msra.mxu1 %v531_v2  ;;  %v530_v5 = vld [vmem:[#allocation6 + $0x30] sm:$0xff]  ;;  %v113_v6 = vpack.c.bf16 %v112_v4, %v111_v3  ;;  %v529_v7 = vld [vmem:[#allocation6 + $0x28] sm:$0xff]  ;;  %v528_v8 = vld [vmem:[#allocation6 + $0x20] sm:$0xff] }
  0x19   :  { %v527_v9 = vld [vmem:[#allocation6 + $0x18] sm:$0xff]  ;;  %v526_v10 = vld [vmem:[#allocation6 + $0x10] sm:$0xff]  ;;  %v525_v11 = vld [vmem:[#allocation6 + $0x8] sm:$0xff] }
  0x1a   :  { %v524_v12 = vld [vmem:[#allocation6] sm:$0xff]  ;;  %v539_v13 = vld [vmem:[#allocation7 + $0x38] sm:$0xff]  ;;  %v538_v14 = vld [vmem:[#allocation7 + $0x30] sm:$0xff] }
  0x1b   :  { %145 = vmatpush.bf16.msra.mxu0 %v522_v1  ;;  %308 = vmatpush.bf16.msra.mxu2 %v539_v13  ;;  %v537_v15 = vld [vmem:[#allocation7 + $0x28] sm:$0xff]  ;;  %v536_v16 = vld [vmem:[#allocation7 + $0x20] sm:$0xff]  ;;  %v535_v25 = vld [vmem:[#allocation7 + $0x18] sm:$0xff] }
  0x1c   :  { %224 = vmatpush.bf16.msra.mxu1 %v530_v5  ;;  %v557_v18 = vld [vmem:[%s793_s2] ss:$0 sm:$0xff]  ;;  %v534_v26 = vld [vmem:[#allocation7 + $0x10] sm:$0xff]  ;;  %v533_v27 = vld [vmem:[#allocation7 + $0x8] sm:$0xff] }
  0x1d   :  { %v532_v28 = vld [vmem:[#allocation7] sm:$0xff]  ;;  %v547_v29 = vld [vmem:[#allocation9 + $0x38] sm:$0xff]  ;;  %v546_v30 = vld [vmem:[#allocation9 + $0x30] sm:$0xff] }
  0x1e   :  { %425 = vmatmul.msk.bf16.vlgmr.msra.gmra.mxu0 %vm134_vm0, %v113_v6  ;;  %393 = vmatpush.bf16.msra.mxu3 %v547_v29  ;;  %v545_v31 = vld [vmem:[#allocation9 + $0x28] sm:$0xff]  ;;  %v544_v32 = vld [vmem:[#allocation9 + $0x20] sm:$0xff]  ;;  %v543_v41 = vld [vmem:[#allocation9 + $0x18] sm:$0xff] }
  0x1f   :  { %309 = vmatpush.bf16.msra.mxu2 %v538_v14  ;;  %v558_v34 = vld [vmem:[%s795_s4] ss:$0 sm:$0xff]  ;;  %v542_v42 = vld [vmem:[#allocation9 + $0x10] sm:$0xff]  ;;  %v541_v43 = vld [vmem:[#allocation9 + $0x8] sm:$0xff] }
  0x20   :  { %225 = vmatpush.bf16.msra.mxu1 %v529_v7  ;;  %v540_v44 = vld [vmem:[#allocation9] sm:$0xff] }
  0x21   :  { %v559_v46 = vld [vmem:[%s797_s6] ss:$0 sm:$0xff] }
  0x22   :  { %394 = vmatpush.bf16.msra.mxu3 %v546_v30  ;;  %v560_v53 = vld [vmem:[%s799_s8] ss:$0 sm:$0xff] }
  0x23   :  { %310 = vmatpush.bf16.msra.mxu2 %v537_v15 }
  0x24   :  { %226 = vmatpush.bf16.msra.mxu1 %v528_v8 }
  0x26   :  { %395 = vmatpush.bf16.msra.mxu3 %v545_v31 }
  0x27   :  { %311 = vmatpush.bf16.msra.mxu2 %v536_v16 }
  0x28   :  { %227 = vmatpush.bf16.msra.mxu1 %v527_v9 }
  0x2a   :  { %396 = vmatpush.bf16.msra.mxu3 %v544_v32 }
  0x2b   :  { %312 = vmatpush.bf16.msra.mxu2 %v535_v25 }
  0x2c   :  { %228 = vmatpush.bf16.msra.mxu1 %v526_v10 }
  0x2e   :  { %397 = vmatpush.bf16.msra.mxu3 %v543_v41 }
  0x2f   :  { %313 = vmatpush.bf16.msra.mxu2 %v534_v26 }
  0x30   :  { %229 = vmatpush.bf16.msra.mxu1 %v525_v11 }
  0x32   :  { %398 = vmatpush.bf16.msra.mxu3 %v542_v42 }
  0x33   :  { %314 = vmatpush.bf16.msra.mxu2 %v533_v27 }
  0x34   :  { %230 = vmatpush.bf16.msra.mxu1 %v524_v12 }
  0x36   :  { %399 = vmatpush.bf16.msra.mxu3 %v541_v43 }
  0x37   :  { %315 = vmatpush.bf16.msra.mxu2 %v532_v28 }
  0x3a   :  { %400 = vmatpush.bf16.msra.mxu3 %v540_v44 }
  0x9b   :  { %v147_v17 = vpop.f32.mrf.mxu0 }
  0x9c   :  { %v148_v19 = vadd.f32 %v557_v18, %v147_v17 }
  0x9e   :  { %v152_v22 = vmax.f32 %v148_v19, 0.0 }
  0xa3   :  { %v149_v20 = vpop.f32.mrf.mxu0 }
  0xa4   :  { %v150_v21 = vadd.f32 %v557_v18, %v149_v20 }
  0xa6   :  { %v153_v23 = vmax.f32 %v150_v21, 0.0 }
  0xa8   :  { %v154_v24 = vpack.c.bf16 %v153_v23, %v152_v22 }
  0xaa   :  { %231 = vmatmul.bf16.vlgmr.msra.gmra.mxu1 %v154_v24 }
 0x127   :  { %v232_v33 = vpop.f32.mrf.mxu1 }
 0x128   :  { %v233_v35 = vadd.f32 %v558_v34, %v232_v33 }
 0x12a   :  { %v237_v38 = vmax.f32 %v233_v35, 0.0 }
 0x12f   :  { %v234_v36 = vpop.f32.mrf.mxu1 }
 0x130   :  { %v235_v37 = vadd.f32 %v558_v34, %v234_v36 }
 0x132   :  { %v238_v39 = vmax.f32 %v235_v37, 0.0 }
 0x134   :  { %v239_v40 = vpack.c.bf16 %v238_v39, %v237_v38 }
 0x136   :  { %316 = vmatmul.bf16.vlgmr.msra.gmra.mxu2 %v239_v40 }
 0x1b9   :  { %v317_v45 = vpop.f32.mrf.mxu2 }
 0x1ba   :  { %v318_v47 = vadd.f32 %v559_v46, %v317_v45 }
 0x1bc   :  { %v322_v50 = vmax.f32 %v318_v47, 0.0 }
 0x1c1   :  { %v319_v48 = vpop.f32.mrf.mxu2 }
 0x1c2   :  { %v320_v49 = vadd.f32 %v559_v46, %v319_v48 }
 0x1c4   :  { %v323_v51 = vmax.f32 %v320_v49, 0.0 }
 0x1c6   :  { %v324_v52 = vpack.c.bf16 %v323_v51, %v322_v50 }
 0x1c8   :  { %401 = vmatmul.bf16.vlgmr.msra.gmra.mxu3 %v324_v52 }
 0x24b   :  { %v402_v54 = vpop.f32.mrf.mxu3 }
 0x24c   :  { %v403_v55 = vadd.f32 %v560_v53, %v402_v54 }
 0x24e   :  { %408 = vst.msk [vmem:[%s800_s9] sm:$0xff] %vm407_vm1, %v403_v55 }
 0x253   :  { %v404_v56 = vpop.f32.mrf.mxu3 }
 0x254   :  { %v405_v57 = vadd.f32 %v560_v53, %v404_v56 }
 0x256   :  { %409 = vst.msk [vmem:[%s800_s9 + $0x8] sm:$0xff] %vm407_vm1, %v405_v57 }
 0x257   :  { %414 = vsyncpa [#allocation3], 1 }
 0x258   :  { %415 = vsyncpa [#allocation5], 1 }
 0x259   :  { %416 = vsyncpa [#allocation8], 1 }

</bundles_post_ra>
